<compile_context>
chip_gen: v5e
topology: v5e:2x2
jax: 0.10.0
libtpu: 0.0.40
codegen_flags: <defaults>
</compile_context>

<pallas_src>
import jax
import jax.numpy as jnp
from jax import lax
from jax.experimental import pallas as pl
from jax.experimental.pallas import tpu as pltpu


# ----------------------------- activation helpers ----------------------------- #

def _make_act(act, softplus_beta):
    if act == "tanh":
        return jnp.tanh
    if act == "softplus":
        beta = float(softplus_beta)
        inv_beta = 1.0 / beta  # trace-time reciprocal: multiply in-kernel, no divide

        def act_fn(z):
            zb = z * beta
            # PyTorch Softplus(beta, threshold=20): linear once beta*z > threshold.
            return jnp.where(zb > 20.0, z,
                             jnp.log1p(jnp.exp(jnp.minimum(zb, 20.0))) * inv_beta)

        return act_fn
    raise ValueError(f"unsupported activation: {act}")


# --------------------------------- the kernel --------------------------------- #

def _make_ritznet_kernel(num_hidden_layers, stacked_hidden, act, softplus_beta,
                         mxu_dtype):
    """linearIn -> act -> (linear_i -> act)* -> linearOut, batch on the lane axis.

    Ref order (stacked):     x, w_in, b_in, w_stack, b_stack, w_out, b_out, out
    Ref order (not stacked): x, w_in, b_in, [w_i, b_i]*,      w_out, b_out, out
    x is (batch_tile, D_in); weights are PyTorch-style (out, in); biases (out, 1).
    Every activation and the output live as (features, batch_tile), so bias-add,
    activation math and the final store are fully lane-dense.
    """
    act_fn = _make_act(act, softplus_beta)

    def cast(a):
        return a if a.dtype == mxu_dtype else a.astype(mxu_dtype)

    def dot(a, b):        # (m, k) @ (k, n) -> (m, n), f32 accumulation
        return lax.dot_general(cast(a), cast(b), (((1,), (0,)), ((), ())),
                               preferred_element_type=jnp.float32)

    def dot_bt(a, b):     # (m, k) x (n, k) -> (m, n): b's transpose folded into MXU
        return lax.dot_general(cast(a), cast(b), (((1,), (1,)), ((), ())),
                               preferred_element_type=jnp.float32)

    def kernel(*refs):
        x_ref = refs[0]
        w_in_ref, b_in_ref = refs[1], refs[2]
        if stacked_hidden and num_hidden_layers > 0:
            w_stk_ref, b_stk_ref = refs[3], refs[4]
            w_out_ref, b_out_ref, o_ref = refs[5], refs[6], refs[7]
        else:
            hrefs = refs[3:3 + 2 * num_hidden_layers]
            w_out_ref = refs[3 + 2 * num_hidden_layers]
            b_out_ref = refs[4 + 2 * num_hidden_layers]
            o_ref = refs[5 + 2 * num_hidden_layers]

        # linearIn + act: (H0, D_in) x (Bt, D_in)^T -> (H0, Bt); batch lands on lanes.
        h = act_fn(dot_bt(w_in_ref[...], x_ref[...]) + b_in_ref[...])

        # hidden layers + act, all (H, Bt) lane-dense.
        if stacked_hidden and num_hidden_layers > 0:
            def body(i, h):
                return act_fn(dot(w_stk_ref[i], h) + b_stk_ref[i])
            # fori_loop bounds the live set to one h-in / one h-out (matters for
            # large batch_tile); unroll short fixed trip-counts for LLO visibility.
            h = lax.fori_loop(0, num_hidden_layers, body, h,
                              unroll=num_hidden_layers <= 8)
        else:
            for li in range(num_hidden_layers):
                h = act_fn(dot(hrefs[2 * li][...], h) + hrefs[2 * li + 1][...])

        # linearOut (no activation): (D_out, H) @ (H, Bt) -> (D_out, Bt),
        # unmasked 128-lane-wide store.
        o_ref[...] = (dot(w_out_ref[...], h) + b_out_ref[...]).astype(o_ref.dtype)

    return kernel


# ------------------------------- tiling heuristics ----------------------------- #

def _num_tensorcores():
    """2 on v7x-class chips (2 TCs/chip), else 1.  Best-effort device-kind sniff."""
    try:
        kind = jax.devices()[0].device_kind.lower()
    except Exception:
        return 1
    return 2 if ("v7" in kind or "7x" in kind) else 1


def _default_mxu_dtype():
    """bf16 MXU operands on v6e/v7x (f32 accumulation is kept either way)."""
    try:
        kind = jax.devices()[0].device_kind.lower()
    except Exception:
        return jnp.float32
    if "v6" in kind or "v7" in kind or "7x" in kind:
        return jnp.bfloat16
    return jnp.float32


def _round_up(n, m):
    return -(-n // m) * m


def _auto_batch_tile(B, d_in, hidden_widths, d_out, num_cores,
                     budget_bytes=20 * 1024 * 1024):
    """Largest 128-multiple tile whose batch-scaled VMEM stays inside budget_bytes.

    The per-lane-column working set for this tiny MLP is well under 2 KiB, so the
    cap lands at many thousands of batch columns; that keeps the per-grid-step
    (~0.35 us) overhead and DMA setup amortized.  Budget is kept below the 32 MiB
    scoped-VMEM limit we request (safe on v5e/v6e's 128 MiB and v7x's 64 MiB).
    """
    pad8 = lambda n: _round_up(max(n, 1), 8)
    pad128 = lambda n: _round_up(max(n, 1), 128)
    h_max = max(hidden_widths) if hidden_widths else max(d_in, d_out)
    # f32 bytes per batch element: double-buffered x block (D_in lane-padded),
    # double-buffered out block (D_out sublane-padded), ~3 live (H, Bt) activations.
    per_elem = 4 * (2 * pad128(d_in) + 2 * pad8(d_out) + 3 * pad8(h_max))
    cap = max(128, (budget_bytes // per_elem) // 128 * 128)
    bt = min(cap, _round_up(B, 128))            # whole batch in one tile if it fits
    if num_cores > 1:                           # v7x: keep >= num_cores grid steps
        per_core = max(128, _round_up(-(-B // num_cores), 128))
        bt = min(bt, per_core)
    return bt


# --------------------------------- the wrapper --------------------------------- #

def ritznet_forward(x, params, *, batch_tile=None, act="tanh", softplus_beta=1.0,
                    mxu_dtype=None, vmem_limit_bytes=32 * 1024 * 1024):
    """RitzNet forward pass in a single Pallas call, batch tiled on the lane axis.

    x: (B, D_in).  params: 'w_in'(H0,D_in), 'b_in'(H0,1), 'ws'[(Hi+1,Hi)],
    'bs'[(Hi+1,1)], 'w_out'(D_out,Hlast), 'b_out'(D_out,1) (PyTorch (out,in) layout).
    Returns (B, D_out).
    """
    B, D_in = x.shape
    num_hidden = len(params["ws"])
    D_out = params["w_out"].shape[0]
    hidden_widths = [params["w_in"].shape[0]] + [w.shape[0] for w in params["ws"]]

    if mxu_dtype is None:
        mxu_dtype = _default_mxu_dtype()

    num_cores = _num_tensorcores()
    if batch_tile is None:
        batch_tile = _auto_batch_tile(B, D_in, hidden_widths, D_out, num_cores)
    assert batch_tile % 128 == 0, "batch_tile must be a multiple of 128 (lane width)"

    # Ragged batches: zero-pad to a whole number of tiles, slice the result.
    B_pad = _round_up(B, batch_tile)
    x_in = x if B_pad == B else jnp.pad(x, ((0, B_pad - B), (0, 0)))
    num_steps = B_pad // batch_tile

    # Stack hidden (w, b) pairs when their shapes are uniform: one replicated block
    # instead of 2*num_hidden, and lets the kernel walk layers with fori_loop.
    stacked = num_hidden > 0 and all(
        w.shape == params["ws"][0].shape and b.shape == params["bs"][0].shape
        for w, b in zip(params["ws"], params["bs"]))

    kernel = _make_ritznet_kernel(num_hidden, stacked, act, softplus_beta, mxu_dtype)

    param_arrays = [params["w_in"], params["b_in"]]
    if stacked:
        param_arrays += [jnp.stack(params["ws"]), jnp.stack(params["bs"])]
    else:
        for w, b in zip(params["ws"], params["bs"]):
            param_arrays += [w, b]
    param_arrays += [params["w_out"], params["b_out"]]

    # Parameters: one full-array block with a constant index_map -> fetched once and
    # VMEM-resident across all batch grid steps.  (They are a few KiB at these
    # widths, so trimming their double-buffering buys nothing worth the risk.)
    def _full_block(arr):
        return pl.BlockSpec(arr.shape, lambda *_: (0,) * arr.ndim)

    in_specs = [pl.BlockSpec((batch_tile, D_in), lambda i: (i, 0))]   # x, untransposed
    in_specs += [_full_block(a) for a in param_arrays]
    out_spec = pl.BlockSpec((D_out, batch_tile), lambda i: (0, i))    # lane-dense store

    if num_cores > 1 and num_steps >= num_cores:
        # v7x: actually shard the batch grid axis across the two TensorCores.
        semantics = (pltpu.CORE_PARALLEL,)
    elif num_steps > 1:
        semantics = ("parallel",)
    else:
        semantics = ("arbitrary",)

    out_t = pl.pallas_call(
        kernel,
        out_shape=jax.ShapeDtypeStruct((D_out, B_pad), jnp.float32),
        grid=(num_steps,),
        in_specs=in_specs,
        out_specs=out_spec,
        compiler_params=pltpu.CompilerParams(
            dimension_semantics=semantics,
            vmem_limit_bytes=vmem_limit_bytes),
    )(x_in, *param_arrays)

    # (D_out, B_pad) -> (B, D_out).  For D_out == 1 this reshape is a bitwise no-op
    # (no HBM transpose); otherwise fall back to a transpose of a tiny array.
    if D_out == 1:
        return out_t.reshape(B_pad, 1)[:B]
    return out_t[:, :B].T


# -------------------------- init / reference / demo --------------------------- #

def init_params(key, input_dim, hidden_list_u):
    """PyTorch-Linear-style uniform init; weights (out, in), biases (out, 1)."""
    dims = [input_dim] + list(hidden_list_u) + [1]
    keys = jax.random.split(key, 2 * (len(dims) - 1))
    ws, bs = [], []
    for li in range(len(dims) - 1):
        fan_in, fan_out = dims[li], dims[li + 1]
        bound = float(fan_in) ** -0.5
        w = jax.random.uniform(keys[2 * li], (fan_out, fan_in), jnp.float32, -bound, bound)
        b = jax.random.uniform(keys[2 * li + 1], (fan_out, 1), jnp.float32, -bound, bound)
        ws.append(w)
        bs.append(b)
    return {"w_in": ws[0], "b_in": bs[0],
            "ws": ws[1:-1], "bs": bs[1:-1],
            "w_out": ws[-1], "b_out": bs[-1]}


def num_params(params):
    arrs = ([params["w_in"], params["b_in"], params["w_out"], params["b_out"]]
            + list(params["ws"]) + list(params["bs"]))
    return sum(int(a.size) for a in arrs)


def ritznet_reference(x, params, *, act="tanh", softplus_beta=1.0):
    """Pure-JAX reference (PyTorch orientation) for correctness checking."""
    act_fn = _make_act(act, softplus_beta)
    h = act_fn(x @ params["w_in"].T + params["b_in"].T)
    for w, b in zip(params["ws"], params["bs"]):
        h = act_fn(h @ w.T + b.T)
    return h @ params["w_out"].T + params["b_out"].T


if __name__ == "__main__":
    # Module-consistent small shapes: args.input_dim = 4, args.hidden_list_u = [32,32,32],
    # output dim = 1; batch = 256.
    batch, input_dim, hidden_list_u = 256, 4, [32, 32, 32]

    key = jax.random.PRNGKey(0)
    k_x, k_p = jax.random.split(key)
    x = jax.random.normal(k_x, (batch, input_dim), jnp.float32)
    params = init_params(k_p, input_dim, hidden_list_u)

    # --- tanh path (args.act_u == 'tanh'); explicit f32 MXU for a tight check ---
    out = jax.block_until_ready(ritznet_forward(x, params, mxu_dtype=jnp.float32))
    ref = ritznet_reference(x, params)
    assert out.shape == (batch, 1), out.shape
    assert jnp.allclose(out, ref, atol=1e-5, rtol=1e-5), float(jnp.max(jnp.abs(out - ref)))

    # --- softplus path (args.act_u == 'softplus', tau_sp = sqrt(#params) as in the module) ---
    tau_sp = float(num_params(params)) ** 0.5
    out_sp = jax.block_until_ready(
        ritznet_forward(x, params, act="softplus", softplus_beta=tau_sp,
                        mxu_dtype=jnp.float32))
    ref_sp = ritznet_reference(x, params, act="softplus", softplus_beta=tau_sp)
    assert jnp.allclose(out_sp, ref_sp, atol=1e-5, rtol=1e-5), \
        float(jnp.max(jnp.abs(out_sp - ref_sp)))

    # --- ragged batch (exercises zero-pad + output slice) ---
    out_r = jax.block_until_ready(ritznet_forward(x[:200], params, mxu_dtype=jnp.float32))
    assert out_r.shape == (200, 1), out_r.shape
    assert jnp.allclose(out_r, ref[:200], atol=1e-5, rtol=1e-5)

    # --- auto MXU dtype (bf16 operands on v6e/v7x, f32 accumulation): loose check ---
    out_lp = jax.block_until_ready(ritznet_forward(x, params))
    err = float(jnp.max(jnp.abs(out_lp - ref)))
    assert err <= 0.1 + 0.05 * float(jnp.max(jnp.abs(ref))), err

    print("KERNEL_OK")
</pallas_src>

<mosaic_0001>
module attributes {stable_mosaic.version = 11 : i64} {
  func.func @kernel(%arg0: i32, %arg1: memref<256x4xf32, #tpu.memory_space<vmem>>, %arg2: memref<32x4xf32, #tpu.memory_space<vmem>>, %arg3: memref<32x1xf32, #tpu.memory_space<vmem>>, %arg4: memref<2x32x32xf32, #tpu.memory_space<vmem>>, %arg5: memref<2x32x1xf32, #tpu.memory_space<vmem>>, %arg6: memref<1x32xf32, #tpu.memory_space<vmem>>, %arg7: memref<1x1xf32, #tpu.memory_space<vmem>>, %arg8: memref<1x256xf32, #tpu.memory_space<vmem>>) attributes {dimension_semantics = [#tpu.dimension_semantics<arbitrary>], iteration_bounds = array<i64: 1>, scalar_prefetch = 0 : i64, scratch_operands = 0 : i64, tpu.core_type = #tpu.core_type<tc>, window_params = [{transform_indices = @transform_0, window_bounds = array<i64: 256, 4>}, {pipeline_mode = #tpu.pipeline_mode<synchronous>, transform_indices = @transform_1, window_bounds = array<i64: 32, 4>}, {pipeline_mode = #tpu.pipeline_mode<synchronous>, transform_indices = @transform_2, window_bounds = array<i64: 32, 1>}, {pipeline_mode = #tpu.pipeline_mode<synchronous>, transform_indices = @transform_3, window_bounds = array<i64: 2, 32, 32>}, {pipeline_mode = #tpu.pipeline_mode<synchronous>, transform_indices = @transform_4, window_bounds = array<i64: 2, 32, 1>}, {pipeline_mode = #tpu.pipeline_mode<synchronous>, transform_indices = @transform_5, window_bounds = array<i64: 1, 32>}, {pipeline_mode = #tpu.pipeline_mode<synchronous>, transform_indices = @transform_6, window_bounds = array<i64: 1, 1>}, {transform_indices = @transform_7, window_bounds = array<i64: 1, 256>}]} {
    %c0 = arith.constant 0 : index
    %c0_0 = arith.constant 0 : index
    %0 = vector.load %arg2[%c0, %c0_0] : memref<32x4xf32, #tpu.memory_space<vmem>>, vector<32x4xf32>
    %c0_1 = arith.constant 0 : index
    %c0_2 = arith.constant 0 : index
    %1 = vector.load %arg1[%c0_1, %c0_2] : memref<256x4xf32, #tpu.memory_space<vmem>>, vector<256x4xf32>
    %cst = arith.constant dense<0.000000e+00> : vector<32x256xf32>
    %2 = tpu.matmul %0, %1, %cst {dimension_numbers = #tpu.dot_dimension_numbers<[1], [1], [0], [0], [0, 0, 1, 0], [], []>} : vector<32x4xf32>, vector<256x4xf32>, vector<32x256xf32> -> vector<32x256xf32>
    %c0_3 = arith.constant 0 : index
    %c0_4 = arith.constant 0 : index
    %3 = vector.load %arg3[%c0_3, %c0_4] : memref<32x1xf32, #tpu.memory_space<vmem>>, vector<32x1xf32>
    %4 = vector.broadcast %3 : vector<32x1xf32> to vector<32x256xf32>
    %5 = arith.addf %2, %4 : vector<32x256xf32>
    %6 = math.tanh %5 : vector<32x256xf32>
    %c0_i32 = arith.constant 0 : i32
    %7 = arith.index_cast %c0_i32 : i32 to index
    %c0_5 = arith.constant 0 : index
    %c0_6 = arith.constant 0 : index
    %8 = vector.load %arg4[%7, %c0_5, %c0_6] : memref<2x32x32xf32, #tpu.memory_space<vmem>>, vector<1x32x32xf32>
    %9 = vector.shape_cast %8 : vector<1x32x32xf32> to vector<32x32xf32>
    %cst_7 = arith.constant dense<0.000000e+00> : vector<32x256xf32>
    %10 = tpu.matmul %9, %6, %cst_7 {dimension_numbers = #tpu.dot_dimension_numbers<[1], [0], [0], [1], [0, 0, 1, 1], [], []>} : vector<32x32xf32>, vector<32x256xf32>, vector<32x256xf32> -> vector<32x256xf32>
    %11 = arith.index_cast %c0_i32 : i32 to index
    %c0_8 = arith.constant 0 : index
    %c0_9 = arith.constant 0 : index
    %12 = vector.load %arg5[%11, %c0_8, %c0_9] : memref<2x32x1xf32, #tpu.memory_space<vmem>>, vector<1x32x1xf32>
    %13 = vector.shape_cast %12 : vector<1x32x1xf32> to vector<32x1xf32>
    %14 = vector.broadcast %13 : vector<32x1xf32> to vector<32x256xf32>
    %15 = arith.addf %10, %14 : vector<32x256xf32>
    %16 = math.tanh %15 : vector<32x256xf32>
    %c1_i32 = arith.constant 1 : i32
    %17 = arith.index_cast %c1_i32 : i32 to index
    %c0_10 = arith.constant 0 : index
    %c0_11 = arith.constant 0 : index
    %18 = vector.load %arg4[%17, %c0_10, %c0_11] : memref<2x32x32xf32, #tpu.memory_space<vmem>>, vector<1x32x32xf32>
    %19 = vector.shape_cast %18 : vector<1x32x32xf32> to vector<32x32xf32>
    %cst_12 = arith.constant dense<0.000000e+00> : vector<32x256xf32>
    %20 = tpu.matmul %19, %16, %cst_12 {dimension_numbers = #tpu.dot_dimension_numbers<[1], [0], [0], [1], [0, 0, 1, 1], [], []>} : vector<32x32xf32>, vector<32x256xf32>, vector<32x256xf32> -> vector<32x256xf32>
    %21 = arith.index_cast %c1_i32 : i32 to index
    %c0_13 = arith.constant 0 : index
    %c0_14 = arith.constant 0 : index
    %22 = vector.load %arg5[%21, %c0_13, %c0_14] : memref<2x32x1xf32, #tpu.memory_space<vmem>>, vector<1x32x1xf32>
    %23 = vector.shape_cast %22 : vector<1x32x1xf32> to vector<32x1xf32>
    %24 = vector.broadcast %23 : vector<32x1xf32> to vector<32x256xf32>
    %25 = arith.addf %20, %24 : vector<32x256xf32>
    %26 = math.tanh %25 : vector<32x256xf32>
    %c2_i32 = arith.constant 2 : i32
    %c0_15 = arith.constant 0 : index
    %c0_16 = arith.constant 0 : index
    %27 = vector.load %arg6[%c0_15, %c0_16] : memref<1x32xf32, #tpu.memory_space<vmem>>, vector<1x32xf32>
    %cst_17 = arith.constant dense<0.000000e+00> : vector<1x256xf32>
    %28 = tpu.matmul %27, %26, %cst_17 {dimension_numbers = #tpu.dot_dimension_numbers<[1], [0], [0], [1], [0, 0, 1, 1], [], []>} : vector<1x32xf32>, vector<32x256xf32>, vector<1x256xf32> -> vector<1x256xf32>
    %c0_18 = arith.constant 0 : index
    %c0_19 = arith.constant 0 : index
    %29 = vector.load %arg7[%c0_18, %c0_19] : memref<1x1xf32, #tpu.memory_space<vmem>>, vector<1x1xf32>
    %30 = vector.broadcast %29 : vector<1x1xf32> to vector<1x256xf32>
    %31 = arith.addf %28, %30 : vector<1x256xf32>
    %c0_20 = arith.constant 0 : index
    %c0_21 = arith.constant 0 : index
    %32 = vector.load %arg8[%c0_20, %c0_21] : memref<1x256xf32, #tpu.memory_space<vmem>>, vector<1x256xf32>
    tpu.vector_store %arg8[%c0_20, %c0_21], %31 {strides = array<i32>} : memref<1x256xf32, #tpu.memory_space<vmem>>, vector<1x256xf32>,
    return
  }
  func.func @transform_0(%arg0: i32) -> (i32, i32) {
    %c0_i32 = arith.constant 0 : i32
    %c0_i32_0 = arith.constant 0 : i32
    return %arg0, %c0_i32 : i32, i32
  }
  func.func @transform_1(%arg0: i32) -> (i32, i32) {
    %c0_i32 = arith.constant 0 : i32
    %c0_i32_0 = arith.constant 0 : i32
    %c0_i32_1 = arith.constant 0 : i32
    return %c0_i32, %c0_i32_0 : i32, i32
  }
  func.func @transform_2(%arg0: i32) -> (i32, i32) {
    %c0_i32 = arith.constant 0 : i32
    %c0_i32_0 = arith.constant 0 : i32
    %c0_i32_1 = arith.constant 0 : i32
    return %c0_i32, %c0_i32_0 : i32, i32
  }
  func.func @transform_3(%arg0: i32) -> (i32, i32, i32) {
    %c0_i32 = arith.constant 0 : i32
    %c0_i32_0 = arith.constant 0 : i32
    %c0_i32_1 = arith.constant 0 : i32
    %c0_i32_2 = arith.constant 0 : i32
    return %c0_i32, %c0_i32_0, %c0_i32_1 : i32, i32, i32
  }
  func.func @transform_4(%arg0: i32) -> (i32, i32, i32) {
    %c0_i32 = arith.constant 0 : i32
    %c0_i32_0 = arith.constant 0 : i32
    %c0_i32_1 = arith.constant 0 : i32
    %c0_i32_2 = arith.constant 0 : i32
    return %c0_i32, %c0_i32_0, %c0_i32_1 : i32, i32, i32
  }
  func.func @transform_5(%arg0: i32) -> (i32, i32) {
    %c0_i32 = arith.constant 0 : i32
    %c0_i32_0 = arith.constant 0 : i32
    %c0_i32_1 = arith.constant 0 : i32
    return %c0_i32, %c0_i32_0 : i32, i32
  }
  func.func @transform_6(%arg0: i32) -> (i32, i32) {
    %c0_i32 = arith.constant 0 : i32
    %c0_i32_0 = arith.constant 0 : i32
    %c0_i32_1 = arith.constant 0 : i32
    return %c0_i32, %c0_i32_0 : i32, i32
  }
  func.func @transform_7(%arg0: i32) -> (i32, i32) {
    %c0_i32 = arith.constant 0 : i32
    %c0_i32_0 = arith.constant 0 : i32
    return %c0_i32, %arg0 : i32, i32
  }
}

</mosaic_0001>

<bundles_post_ra>
// kernel: tpu_custom_call.1
= control target key start
LH: loop header
LB: loop body
LE: loop exit
PB: predicated region body
PF: predicated region fallthrough
CT: control target
= control target key end

     0   :  { %s979_s0 = inlined_call_operand.vmem [shape: f32[256,4], index: 0, kind: input, shape index: {}]   ;;  %s980_s1 = inlined_call_operand.vmem [shape: f32[32,4], index: 1, kind: input, shape index: {}]   ;;  %s981_s2 = inlined_call_operand.vmem [shape: f32[32,1], index: 2, kind: input, shape index: {}]   ;;  %s982_s3 = inlined_call_operand.vmem [shape: f32[2,32,32], index: 3, kind: input, shape index: {}]   ;;  %s983_s4 = inlined_call_operand.vmem [shape: f32[2,32,1], index: 4, kind: input, shape index: {}]   ;;  %s984_s5 = inlined_call_operand.vmem [shape: f32[1,32], index: 5, kind: input, shape index: {}]   ;;  %s985_s6 = inlined_call_operand.<no memory space> [shape: f32[1,1], index: 6, kind: input, shape index: {}]   ;;  %s986_s7 = inlined_call_operand.hbm [shape: f32[1,256], index: 7, kind: output, shape index: {}]  }
   0x1   :  { %v12_v0 = vstv %s985_s6 }
   0x2   :  { %13 = vst [vmem:[#allocation2] sm:$0x1] %v12_v0 }
   0x3   :  { %v48_v1 = vld [vmem:[%s979_s0 + $0x78] sm:$0xff]  ;;  %vm89_vm0 = vcmask 31744   ;;  %v47_v3 = vld [vmem:[%s979_s0 + $0x70] sm:$0xff]  ;;  %v46_v5 = vld [vmem:[%s979_s0 + $0x68] sm:$0xff] }
   0x4   :  { %v64_v2 = vld [vmem:[%s979_s0 + $0xf8] sm:$0xff]  ;;  %557 = vmatpush.xpose.msk.msra.mxu0 %vm89_vm0, %v48_v1  ;;  %v63_v4 = vld [vmem:[%s979_s0 + $0xf0] sm:$0xff]  ;;  %v62_v6 = vld [vmem:[%s979_s0 + $0xe8] sm:$0xff] }
   0x5   :  { %577 = vmatpush.xpose.msk.msra.mxu1 %vm89_vm0, %v64_v2 }
   0x8   :  { %558 = vmatpush.xpose.msk.msra.mxu0 %vm89_vm0, %v47_v3 }
   0x9   :  { %578 = vmatpush.xpose.msk.msra.mxu1 %vm89_vm0, %v63_v4 }
   0xa   :  { %14 = vsyncpa [#allocation4], 0  ;;  %v45_v7 = vld [vmem:[%s979_s0 + $0x60] sm:$0xff]  ;;  %v44_v9 = vld [vmem:[%s979_s0 + $0x58] sm:$0xff]  ;;  %v702_v18 = vmov 0   ;;  %vm292_vm1 = vcmask 261120  }
   0xb   :  { %v61_v8 = vld [vmem:[%s979_s0 + $0xe0] sm:$0xff]  ;;  %v60_v10 = vld [vmem:[%s979_s0 + $0xd8] sm:$0xff]  ;;  %v43_v11 = vld [vmem:[%s979_s0 + $0x50] sm:$0xff]  ;;  %625 = vset.pattern.permute.xlu0 %v702_v18  ;;  %626 = vset.pattern.permute.xlu1 %v702_v18  ;;  %s703_s12 = smov [#allocation3]   ;;  %vm533_vm2 = vcmask 1040384  }
   0xc   :  { %559 = vmatpush.xpose.msk.msra.mxu0 %vm89_vm0, %v46_v5  ;;  %v59_v12 = vld [vmem:[%s979_s0 + $0xd0] sm:$0xff]  ;;  %v42_v13 = vld [vmem:[%s979_s0 + $0x48] sm:$0xff]  ;;  %v68_v15 = vld [vmem:[%s981_s2 + $0x18] sm:$0xff]  ;;  %627 = vset.pattern.permute.xlu2 %v702_v18  ;;  %s546_s13 = sshll.u32 %s703_s12, 4  ;;  %s547_s13 = int_to_ptr.vmem [resolvable:$true] %s546_s13 }
   0xd   :  { %579 = vmatpush.xpose.msk.msra.mxu1 %vm89_vm0, %v62_v6  ;;  %v58_v14 = vld [vmem:[%s979_s0 + $0xc8] sm:$0xff]  ;;  %v41_v16 = vld [vmem:[%s979_s0 + $0x40] sm:$0xff]  ;;  %86 = vperm.xlu0 %625, %v68_v15   ;;  %v40_v19 = vld [vmem:[%s979_s0 + $0x38] sm:$0xff] }
   0xe   :  { %v57_v17 = vld [vmem:[%s979_s0 + $0xc0] sm:$0xff]  ;;  %v56_v20 = vld [vmem:[%s979_s0 + $0xb8] sm:$0xff]  ;;  %v66_v21 = vld [vmem:[%s981_s2 + $0x8] sm:$0xff] }
   0xf   :  { %v67_v22 = vld [vmem:[%s981_s2 + $0x10] sm:$0xff]  ;;  %76 = vperm.xlu1 %626, %v66_v21   ;;  %v38_v25 = vld [vmem:[%s979_s0 + $0x28] sm:$0xff]  ;;  %v65_v27 = vld [vmem:[%s981_s2] sm:$0xff] }
  0x10   :  { %560 = vmatpush.xpose.msk.msra.mxu0 %vm89_vm0, %v45_v7  ;;  %v39_v23 = vld [vmem:[%s979_s0 + $0x30] sm:$0xff]  ;;  %v54_v26 = vld [vmem:[%s979_s0 + $0xa8] sm:$0xff]  ;;  %v37_v29 = vld [vmem:[%s979_s0 + $0x20] sm:$0xff] }
  0x11   :  { %580 = vmatpush.xpose.msk.msra.mxu1 %vm89_vm0, %v61_v8  ;;  %v55_v24 = vld [vmem:[%s979_s0 + $0xb0] sm:$0xff]  ;;  %v269_v28 = vld [vmem:[%s983_s4 + $0x8] sm:$0xff]  ;;  %v53_v30 = vld [vmem:[%s979_s0 + $0xa0] sm:$0xff] }
  0x12   :  { %v36_v31 = vld [vmem:[%s979_s0 + $0x18] sm:$0xff]  ;;  %v611_v33 = vld [vmem:[%s983_s4 + $0x30] sm:$0xff]  ;;  %v34_v36 = vld [vmem:[%s979_s0 + $0x8] sm:$0xff] }
  0x13   :  { %v52_v32 = vld [vmem:[%s979_s0 + $0x98] sm:$0xff]  ;;  %v35_v34 = vld [vmem:[%s979_s0 + $0x10] sm:$0xff]  ;;  %v50_v37 = vld [vmem:[%s979_s0 + $0x88] sm:$0xff] }
  0x14   :  { %561 = vmatpush.xpose.msk.msra.mxu0 %vm89_vm0, %v44_v9  ;;  %v51_v35 = vld [vmem:[%s979_s0 + $0x90] sm:$0xff]  ;;  %v268_v38 = vld [vmem:[%s983_s4] sm:$0xff]  ;;  %v610_v43 = vld [vmem:[%s983_s4 + $0x28] sm:$0xff] }
  0x15   :  { %581 = vmatpush.xpose.msk.msra.mxu1 %vm89_vm0, %v60_v10  ;;  %81 = vperm.xlu0 %625, %v67_v22   ;;  %v480_v39 = vld [vmem:[#allocation2] sm:$0x1]  ;;  %v30_v44 = vld [vmem:[%s980_s1 + $0x8] sm:$0xff]  ;;  %v31_v45 = vld [vmem:[%s980_s1 + $0x10] sm:$0xff] }
  0x16   :  { %v33_v40 = vld [vmem:[%s979_s0] sm:$0xff]  ;;  %v32_v46 = vld [vmem:[%s980_s1 + $0x18] sm:$0xff] }
  0x17   :  { %71 = vperm.xlu1 %626, %v65_v27   ;;  %v49_v41 = vld [vmem:[%s979_s0 + $0x80] sm:$0xff]  ;;  %v271_v5 = vld [vmem:[%s983_s4 + $0x18] sm:$0xff] }
  0x18   :  { %562 = vmatpush.xpose.msk.msra.mxu0 %vm89_vm0, %v43_v11  ;;  %v29_v42 = vld [vmem:[%s980_s1] sm:$0xff]  ;;  %289 = vperm.xlu2 %627, %v271_v5   ;;  %v612_v15 = vld [vmem:[%s983_s4 + $0x38] sm:$0xff] }
  0x19   :  { %582 = vmatpush.xpose.msk.msra.mxu1 %vm89_vm0, %v59_v12  ;;  %v264_v10 = vld [vmem:[%s982_s3] sm:$0xff]  ;;  %v267_v18 = vld [vmem:[%s982_s3 + $0x18] sm:$0xff] }
  0x1c   :  { %563 = vmatpush.xpose.msk.msra.mxu0 %vm89_vm0, %v42_v13  ;;  %v270_v13 = vld [vmem:[%s983_s4 + $0x10] sm:$0xff] }
  0x1d   :  { %583 = vmatpush.xpose.msk.msra.mxu1 %vm89_vm0, %v58_v14  ;;  %279 = vperm.xlu0 %625, %v269_v28   ;;  %v265_v14 = vld [vmem:[%s982_s3 + $0x8] sm:$0xff] }
  0x1f   :  { %274 = vperm.xlu1 %626, %v268_v38  }
  0x20   :  { %564 = vmatpush.xpose.msk.msra.mxu0 %vm89_vm0, %v41_v16  ;;  %284 = vperm.xlu2 %627, %v270_v13   ;;  %v266_v16 = vld [vmem:[%s982_s3 + $0x10] sm:$0xff]  ;;  %v479_v13 = vld [vmem:[%s984_s5] sm:$0x1]  ;;  %s548_s5 = sshll.u32 %s986_s7, 4  ;;  %s549_s5 = int_to_ptr.hbm [resolvable:$true] %s548_s5 }
  0x21   :  { %584 = vmatpush.xpose.msk.msra.mxu1 %vm89_vm0, %v57_v17  ;;  %v609_v17 = vld [vmem:[%s983_s4 + $0x20] sm:$0xff] }
  0x24   :  { %565 = vmatpush.xpose.msk.msra.mxu0 %vm89_vm0, %v40_v19 }
  0x25   :  { %585 = vmatpush.xpose.msk.msra.mxu1 %vm89_vm0, %v56_v20  ;;  %393 = vperm.xlu0 %625, %v611_v33  }
  0x27   :  { %388 = vperm.xlu1 %626, %v610_v43  }
  0x28   :  { %566 = vmatpush.xpose.msk.msra.mxu0 %vm89_vm0, %v39_v23  ;;  %398 = vperm.xlu2 %627, %v612_v15  }
  0x29   :  { %586 = vmatpush.xpose.msk.msra.mxu1 %vm89_vm0, %v55_v24 }
  0x2c   :  { %567 = vmatpush.xpose.msk.msra.mxu0 %vm89_vm0, %v38_v25 }
  0x2d   :  { %587 = vmatpush.xpose.msk.msra.mxu1 %vm89_vm0, %v54_v26  ;;  %483 = vperm.xlu0 %625, %v480_v39  }
  0x30   :  { %568 = vmatpush.xpose.msk.msra.mxu0 %vm89_vm0, %v37_v29  ;;  %383 = vperm.xlu2 %627, %v609_v17  }
  0x31   :  { %588 = vmatpush.xpose.msk.msra.mxu1 %vm89_vm0, %v53_v30 }
  0x34   :  { %569 = vmatpush.xpose.msk.msra.mxu0 %vm89_vm0, %v36_v31 }
  0x35   :  { %589 = vmatpush.xpose.msk.msra.mxu1 %vm89_vm0, %v52_v32 }
  0x38   :  { %570 = vmatpush.xpose.msk.msra.mxu0 %vm89_vm0, %v35_v34 }
  0x39   :  { %590 = vmatpush.xpose.msk.msra.mxu1 %vm89_vm0, %v51_v35 }
  0x3c   :  { %571 = vmatpush.xpose.msk.msra.mxu0 %vm89_vm0, %v34_v36 }
  0x3d   :  { %591 = vmatpush.xpose.msk.msra.mxu1 %vm89_vm0, %v50_v37 }
  0x40   :  { %572 = vmatpush.xpose.msk.msra.mxu0 %vm89_vm0, %v33_v40 }
  0x41   :  { %592 = vmatpush.xpose.msk.msra.mxu1 %vm89_vm0, %v49_v41 }
  0x43   :  { %573 = vmatmul.msk.f32.vlgmr.msra.gmra.mxu0 %vm89_vm0, %v29_v42 }
  0x44   :  { %593 = vmatmul.msk.f32.vlgmr.msra.gmra.mxu1 %vm89_vm0, %v29_v42 }
  0x4b   :  { %574 = vmatmul.msk.f32.gmra.mxu0 %vm89_vm0, %v30_v44 }
  0x4c   :  { %594 = vmatmul.msk.f32.gmra.mxu1 %vm89_vm0, %v30_v44 }
  0x53   :  { %575 = vmatmul.msk.f32.gmra.mxu0 %vm89_vm0, %v31_v45 }
  0x54   :  { %595 = vmatmul.msk.f32.gmra.mxu1 %vm89_vm0, %v31_v45  ;;  %v605_v45 = vld [vmem:[%s982_s3 + $0x20] sm:$0xff] }
  0x5b   :  { %576 = vmatmul.msk.f32.gmra.mxu0 %vm89_vm0, %v32_v46 }
  0x5c   :  { %596 = vmatmul.msk.f32.gmra.mxu1 %vm89_vm0, %v32_v46 }
  0x72   :  { %v290_v23 = vpop.permute.xlu2 %289 }
  0x7a   :  { %v285_v26 = vpop.permute.xlu2 %284 }
  0x7f   :  { %v87_v51 = vpop.permute.xlu0 %86 }
  0x81   :  { %v77_v54 = vpop.permute.xlu1 %76 }
  0x87   :  { %v82_v55 = vpop.permute.xlu0 %81 }
  0x89   :  { %v72_v62 = vpop.permute.xlu1 %71 }
  0x8f   :  { %v280_v31 = vpop.permute.xlu0 %279 }
  0x91   :  { %v275_v35 = vpop.permute.xlu1 %274 }
  0xc0   :  { %v215_v47 = vpop.f32.mrf.mxu0 }
  0xc1   :  { %v244_v48 = vpop.f32.mrf.mxu1  ;;  %v216_v1 = vadd.f32 %v215_v47, %v72_v62 }
  0xc2   :  { %v245_v2 = vadd.f32 %v244_v48, %v72_v62  ;;  %v606_v48 = vld [vmem:[%s982_s3 + $0x28] sm:$0xff] }
  0xc8   :  { %v218_v49 = vpop.f32.mrf.mxu0 }
  0xc9   :  { %v247_v50 = vpop.f32.mrf.mxu1  ;;  %v219_v63 = vadd.f32 %v218_v49, %v77_v54  ;;  %v607_v49 = vld [vmem:[%s982_s3 + $0x30] sm:$0xff] }
  0xca   :  { %v248_v0 = vadd.f32 %v247_v50, %v77_v54  ;;  %v608_v50 = vld [vmem:[%s982_s3 + $0x38] sm:$0xff] }
  0xd0   :  { %v221_v52 = vpop.f32.mrf.mxu0 }
  0xd1   :  { %v250_v53 = vpop.f32.mrf.mxu1  ;;  %v222_v58 = vadd.f32 %v221_v52, %v82_v55 }
  0xd2   :  { %v251_v61 = vadd.f32 %v250_v53, %v82_v55 }
  0xd8   :  { %v224_v56 = vpop.f32.mrf.mxu0 }
  0xd9   :  { %v253_v57 = vpop.f32.mrf.mxu1  ;;  %v225_v59 = vadd.f32 %v224_v56, %v87_v51 }
  0xda   :  { %v254_v60 = vadd.f32 %v253_v57, %v87_v51  ;;  %v399_v57 = vpop.permute.xlu2 %398 }
  0xdb   :  { %628 = vtanh.f32 %v225_v59 }
  0xdc   :  { %630 = vtanh.f32 %v254_v60 }
  0xdd   :  { %632 = vtanh.f32 %v222_v58  ;;  %v394_v58 = vpop.permute.xlu0 %393 }
  0xde   :  { %634 = vtanh.f32 %v251_v61 }
  0xdf   :  { %636 = vtanh.f32 %v219_v63  ;;  %v389_v63 = vpop.permute.xlu1 %388 }
  0xe0   :  { %638 = vtanh.f32 %v248_v0 }
  0xe1   :  { %v629_v3 = vpop.eup %628  ;;  %640 = vtanh.f32 %v216_v1 }
  0xe2   :  { %v631_v4 = vpop.eup %630  ;;  %642 = vtanh.f32 %v245_v2  ;;  %317 = vmatpush.msra.mxu2 %v629_v3  ;;  %v384_v3 = vpop.permute.xlu2 %383 }
  0xe3   :  { %v633_v6 = vpop.eup %632  ;;  %346 = vmatpush.msra.mxu3 %v631_v4 }
  0xe4   :  { %v635_v7 = vpop.eup %634  ;;  %318 = vmatpush.msra.mxu2 %v633_v6 }
  0xe5   :  { %v637_v8 = vpop.eup %636  ;;  %347 = vmatpush.msra.mxu3 %v635_v7 }
  0xe6   :  { %v639_v9 = vpop.eup %638  ;;  %319 = vmatpush.msra.mxu2 %v637_v8 }
  0xe7   :  { %v641_v11 = vpop.eup %640  ;;  %348 = vmatpush.msra.mxu3 %v639_v9 }
  0xe8   :  { %v643_v12 = vpop.eup %642  ;;  %320 = vmatpush.msra.mxu2 %v641_v11 }
  0xe9   :  { %349 = vmatpush.msra.mxu3 %v643_v12  ;;  %597 = vmatmul.msk.f32.vlgmr.msra.gmra.mxu2 %vm292_vm1, %v264_v10 }
  0xea   :  { %601 = vmatmul.msk.f32.vlgmr.msra.gmra.mxu3 %vm292_vm1, %v264_v10 }
  0xf1   :  { %598 = vmatmul.msk.f32.gmra.mxu2 %vm292_vm1, %v265_v14 }
  0xf2   :  { %602 = vmatmul.msk.f32.gmra.mxu3 %vm292_vm1, %v265_v14 }
  0xf9   :  { %599 = vmatmul.msk.f32.gmra.mxu2 %vm292_vm1, %v266_v16 }
  0xfa   :  { %603 = vmatmul.msk.f32.gmra.mxu3 %vm292_vm1, %v266_v16  ;;  %v484_v16 = vpop.permute.xlu0 %483 }
  0xfb   :  { %v486_v17 = vperm.slane %v484_v16, 0 }
 0x101   :  { %600 = vmatmul.msk.f32.gmra.mxu2 %vm292_vm1, %v267_v18 }
 0x102   :  { %604 = vmatmul.msk.f32.gmra.mxu3 %vm292_vm1, %v267_v18  ;;  %v536_v18 = vlaneseq }
 0x104   :  { %vm538_vm3 = vcmp.lt.s32.totalorder %v536_v18, 256 }
 0x16c   :  { %v322_v19 = vpop.f32.mrf.mxu2 }
 0x16d   :  { %v351_v20 = vpop.f32.mrf.mxu3  ;;  %v323_v37 = vadd.f32 %v322_v19, %v275_v35 }
 0x16e   :  { %v352_v38 = vadd.f32 %v351_v20, %v275_v35 }
 0x174   :  { %v325_v21 = vpop.f32.mrf.mxu2 }
 0x175   :  { %v354_v22 = vpop.f32.mrf.mxu3  ;;  %v326_v34 = vadd.f32 %v325_v21, %v280_v31 }
 0x176   :  { %v355_v36 = vadd.f32 %v354_v22, %v280_v31 }
 0x17c   :  { %v328_v24 = vpop.f32.mrf.mxu2 }
 0x17d   :  { %v357_v25 = vpop.f32.mrf.mxu3  ;;  %v329_v28 = vadd.f32 %v328_v24, %v285_v26 }
 0x17e   :  { %v358_v32 = vadd.f32 %v357_v25, %v285_v26 }
 0x184   :  { %v331_v27 = vpop.f32.mrf.mxu2 }
 0x185   :  { %v332_v29 = vadd.f32 %v331_v27, %v290_v23  ;;  %v360_v30 = vpop.f32.mrf.mxu3 }
 0x186   :  { %v361_v33 = vadd.f32 %v360_v30, %v290_v23 }
 0x187   :  { %644 = vtanh.f32 %v332_v29 }
 0x188   :  { %646 = vtanh.f32 %v361_v33 }
 0x189   :  { %648 = vtanh.f32 %v329_v28 }
 0x18a   :  { %650 = vtanh.f32 %v358_v32 }
 0x18b   :  { %652 = vtanh.f32 %v326_v34 }
 0x18c   :  { %654 = vtanh.f32 %v355_v36 }
 0x18d   :  { %v645_v39 = vpop.eup %644  ;;  %656 = vtanh.f32 %v323_v37 }
 0x18e   :  { %v647_v40 = vpop.eup %646  ;;  %658 = vtanh.f32 %v352_v38  ;;  %425 = vmatpush.msrb.mxu2 %v645_v39 }
 0x18f   :  { %v649_v41 = vpop.eup %648  ;;  %454 = vmatpush.msrb.mxu3 %v647_v40 }
 0x190   :  { %v651_v42 = vpop.eup %650  ;;  %426 = vmatpush.msrb.mxu2 %v649_v41 }
 0x191   :  { %v653_v43 = vpop.eup %652  ;;  %455 = vmatpush.msrb.mxu3 %v651_v42 }
 0x192   :  { %v655_v44 = vpop.eup %654  ;;  %427 = vmatpush.msrb.mxu2 %v653_v43 }
 0x193   :  { %v657_v46 = vpop.eup %656  ;;  %456 = vmatpush.msrb.mxu3 %v655_v44 }
 0x194   :  { %v659_v47 = vpop.eup %658  ;;  %428 = vmatpush.msrb.mxu2 %v657_v46 }
 0x195   :  { %457 = vmatpush.msrb.mxu3 %v659_v47  ;;  %613 = vmatmul.msk.f32.vlgmr.msrb.gmra.mxu2 %vm292_vm1, %v605_v45 }
 0x196   :  { %617 = vmatmul.msk.f32.vlgmr.msrb.gmra.mxu3 %vm292_vm1, %v605_v45 }
 0x19d   :  { %614 = vmatmul.msk.f32.gmra.mxu2 %vm292_vm1, %v606_v48 }
 0x19e   :  { %618 = vmatmul.msk.f32.gmra.mxu3 %vm292_vm1, %v606_v48 }
 0x1a5   :  { %615 = vmatmul.msk.f32.gmra.mxu2 %vm292_vm1, %v607_v49 }
 0x1a6   :  { %619 = vmatmul.msk.f32.gmra.mxu3 %vm292_vm1, %v607_v49 }
 0x1ad   :  { %616 = vmatmul.msk.f32.gmra.mxu2 %vm292_vm1, %v608_v50 }
 0x1ae   :  { %620 = vmatmul.msk.f32.gmra.mxu3 %vm292_vm1, %v608_v50 }
 0x218   :  { %v430_v51 = vpop.f32.mrf.mxu2 }
 0x219   :  { %v459_v52 = vpop.f32.mrf.mxu3  ;;  %v431_v5 = vadd.f32 %v430_v51, %v384_v3 }
 0x21a   :  { %v460_v6 = vadd.f32 %v459_v52, %v384_v3 }
 0x220   :  { %v433_v53 = vpop.f32.mrf.mxu2 }
 0x221   :  { %v462_v54 = vpop.f32.mrf.mxu3  ;;  %v434_v2 = vadd.f32 %v433_v53, %v389_v63 }
 0x222   :  { %v463_v4 = vadd.f32 %v462_v54, %v389_v63 }
 0x228   :  { %v436_v55 = vpop.f32.mrf.mxu2 }
 0x229   :  { %v465_v56 = vpop.f32.mrf.mxu3  ;;  %v437_v60 = vadd.f32 %v436_v55, %v394_v58 }
 0x22a   :  { %v466_v0 = vadd.f32 %v465_v56, %v394_v58 }
 0x230   :  { %v439_v59 = vpop.f32.mrf.mxu2 }
 0x231   :  { %v440_v61 = vadd.f32 %v439_v59, %v399_v57  ;;  %v468_v62 = vpop.f32.mrf.mxu3 }
 0x232   :  { %v469_v1 = vadd.f32 %v468_v62, %v399_v57 }
 0x233   :  { %660 = vtanh.f32 %v440_v61 }
 0x234   :  { %662 = vtanh.f32 %v469_v1 }
 0x235   :  { %664 = vtanh.f32 %v437_v60 }
 0x236   :  { %666 = vtanh.f32 %v466_v0 }
 0x237   :  { %668 = vtanh.f32 %v434_v2 }
 0x238   :  { %670 = vtanh.f32 %v463_v4 }
 0x239   :  { %v661_v7 = vpop.eup %660  ;;  %672 = vtanh.f32 %v431_v5 }
 0x23a   :  { %v663_v8 = vpop.eup %662  ;;  %674 = vtanh.f32 %v460_v6  ;;  %502 = vmatpush.msra.mxu2 %v661_v7 }
 0x23b   :  { %v665_v9 = vpop.eup %664  ;;  %522 = vmatpush.msra.mxu3 %v663_v8 }
 0x23c   :  { %v667_v10 = vpop.eup %666  ;;  %503 = vmatpush.msra.mxu2 %v665_v9 }
 0x23d   :  { %v669_v11 = vpop.eup %668  ;;  %523 = vmatpush.msra.mxu3 %v667_v10 }
 0x23e   :  { %v671_v12 = vpop.eup %670  ;;  %504 = vmatpush.msra.mxu2 %v669_v11 }
 0x23f   :  { %v673_v14 = vpop.eup %672  ;;  %524 = vmatpush.msra.mxu3 %v671_v12 }
 0x240   :  { %v675_v15 = vpop.eup %674  ;;  %505 = vmatpush.msra.mxu2 %v673_v14 }
 0x241   :  { %525 = vmatpush.msra.mxu3 %v675_v15  ;;  %621 = vmatmul.msk.f32.vlgmr.msra.gmra.mxu2 %vm292_vm1, %v479_v13 }
 0x242   :  { %622 = vmatmul.msk.f32.vlgmr.msra.gmra.mxu3 %vm292_vm1, %v479_v13 }
 0x2c4   :  { %v507_v19 = vpop.f32.mrf.mxu2 }
 0x2c5   :  { %v527_v20 = vpop.f32.mrf.mxu3  ;;  %v508_v22 = vadd.f32 %v507_v19, %v486_v17 }
 0x2c6   :  { %v528_v21 = vadd.f32 %v527_v20, %v486_v17 }
 0x2c8   :  { %v532_v23 = vrot.slane %v528_v21, 7 }
 0x2ca   :  { %v534_v24 = vsel %vm533_vm2, %v508_v22, %v532_v23 }
 0x2cb   :  { %540 = vst.msk [vmem:[#allocation3] sm:$0x3] %vm538_vm3, %v534_v24 }
 0x2cc   :  { %551 = dma.vmem_to_hbm [thread:$0]  %s547_s13, 32, %s549_s5, [#allocation4]  }
 0x2cd   :  { %700 = dma.done.wait [#allocation4], 32  }
 0x2ce   :  { %701 = vsyncadd [#allocation4], 4294967264 }
 0x2cf   :  { %556 = vsyncpa [#allocation4], 1 }

</bundles_post_ra>
